<compile_context>
chip_gen: v6e
topology: v6e:2x2x1
jax: 0.10.0
libtpu: 0.0.40
codegen_flags: <defaults>
</compile_context>

<pallas_src>
import functools

import jax
import jax.numpy as jnp
from jax.experimental import pallas as pl
from jax.experimental.pallas import tpu as pltpu

_LANE = 128
_SUBLANE = 8


def _fill_values(dtype):
    """Identity elements for min / max in `dtype` (used to mask ragged tiles)."""
    d = jnp.dtype(dtype)
    if jnp.issubdtype(d, jnp.floating):
        return jnp.asarray(jnp.inf, d), jnp.asarray(-jnp.inf, d)
    info = jnp.iinfo(d)
    return jnp.asarray(info.max, d), jnp.asarray(info.min, d)


@functools.lru_cache(maxsize=None)
def _vmem_budget():
    """Returns (input-block byte budget, scoped-VMEM limit to request).

    Generation-aware: v7x has only 64 MiB of physical VMEM per TensorCore while
    v5e/v6e have 128 MiB. The block budget leaves room for the double-buffered
    input block plus the (tiny) accumulators / outputs / internal scratch."""
    phys = 128 * 1024 * 1024
    try:
        phys = int(getattr(pltpu.get_tpu_info(), "vmem_capacity_bytes", phys))
    except Exception:
        pass
    if phys <= 64 * 1024 * 1024:       # v7x-class: 64 MiB per TensorCore
        limit = 40 * 1024 * 1024
    else:                               # v5e / v6e: 128 MiB
        limit = 48 * 1024 * 1024
    block = (limit - 8 * 1024 * 1024) // 2   # double-buffered input block
    return block, limit


def _choose_nd_blocks(N, C, F, itemsize, budget):
    """(nb, tile, rem): batch rows per step, lane tile, valid lanes of last tile."""
    per_lane = max(1, C * itemsize)
    max_lanes = max(_LANE, budget // per_lane)
    if F <= max_lanes:
        tile, rem = F, 0          # full extent: no 128-alignment requirement
    else:
        tile = max(_LANE, min((F // _LANE) * _LANE, (max_lanes // _LANE) * _LANE))
        rem = F % tile
    # Block several batch rows per grid step (fewer / larger DMAs). nb divides N
    # so there is never a ragged batch block.
    per_n = max(1, C * tile * itemsize)
    max_nb = max(1, budget // per_n)
    nb = 1
    for d in range(min(N, max_nb), 0, -1):
        if N % d == 0:
            nb = d
            break
    return nb, tile, rem


# --------------------------------------------------------------------------
# Kernels
# --------------------------------------------------------------------------
def _nd_minmax_kernel(rem, x_ref, min_ref, max_ref, min_acc, max_acc):
    """Per-channel min/max over grid (batch blocks [parallel], feature tiles).

    rem:          static number of valid lanes in the last feature tile (0 = exact).
    x_ref:        (Nb, C, tile) input tile in its native dtype.
    min/max_ref:  (1, C, 1) f32 per-batch-block partials, written once per
                  batch block (at its last feature tile).
    min/max_acc:  (C, 1) f32 VMEM accumulators, reset at j == 0 of every batch
                  block (megacore-safe)."""
    j = pl.program_id(1)
    nj = pl.num_programs(1)

    @pl.when(j == 0)
    def _init():
        min_acc[...] = jnp.full(min_acc.shape, jnp.inf, dtype=min_acc.dtype)
        max_acc[...] = jnp.full(max_acc.shape, -jnp.inf, dtype=max_acc.dtype)

    x = x_ref[...]  # native dtype; min/max are exact, so no widen of the tile

    def _accum(xmin_src, xmax_src):
        # In-register tree reduction of the whole tile down to (C, 1); the only
        # VMEM read-modify-write per step is the tiny (C, 1) accumulator.
        pmin = jnp.min(jnp.min(xmin_src, axis=2, keepdims=True), axis=0)
        pmax = jnp.max(jnp.max(xmax_src, axis=2, keepdims=True), axis=0)
        min_acc[...] = jnp.minimum(min_acc[...], pmin.astype(jnp.float32))
        max_acc[...] = jnp.maximum(max_acc[...], pmax.astype(jnp.float32))

    if rem == 0:
        _accum(x, x)
    else:
        # Only the last feature tile is ragged; mask there, full speed elsewhere.
        is_last = j == nj - 1
        pos_fill, neg_fill = _fill_values(x.dtype)

        @pl.when(is_last)
        def _masked():
            lane = jax.lax.broadcasted_iota(jnp.int32, x.shape, 2)
            valid = lane < rem
            _accum(jnp.where(valid, x, pos_fill), jnp.where(valid, x, neg_fill))

        @pl.when(jnp.logical_not(is_last))
        def _full():
            _accum(x, x)

    @pl.when(j == nj - 1)
    def _finalize():
        min_ref[...] = min_acc[...][None]   # (1, C, 1)
        max_ref[...] = max_acc[...][None]


def _2d_minmax_kernel(rem_n, x_ref, min_ref, max_ref):
    """Linear-layer path: (tile_n, C) blocks with channels on the lane axis.

    Each grid step writes its own lane-dense (1, 1, C) partial (no resident
    accumulator), so the single grid axis is fully 'parallel' (megacore)."""
    x = x_ref[...]  # (tile_n, C), native dtype

    def _emit(xmin_src, xmax_src):
        min_ref[...] = jnp.min(xmin_src, axis=0, keepdims=True)[None].astype(jnp.float32)
        max_ref[...] = jnp.max(xmax_src, axis=0, keepdims=True)[None].astype(jnp.float32)

    if rem_n == 0:
        _emit(x, x)
    else:
        is_last = pl.program_id(0) == pl.num_programs(0) - 1
        pos_fill, neg_fill = _fill_values(x.dtype)

        @pl.when(is_last)
        def _masked():
            row = jax.lax.broadcasted_iota(jnp.int32, x.shape, 0)
            valid = row < rem_n
            _emit(jnp.where(valid, x, pos_fill), jnp.where(valid, x, neg_fill))

        @pl.when(jnp.logical_not(is_last))
        def _full():
            _emit(x, x)


# --------------------------------------------------------------------------
# Wrappers
# --------------------------------------------------------------------------
@functools.partial(jax.jit, static_argnums=(3,))
def _running_minmax_nd(x_view, prev_min, prev_max, block_budget):
    """x_view: (N, C, F) natural-layout view; prev_*: (C,) f32 running state."""
    N, C, F = x_view.shape
    itemsize = jnp.dtype(x_view.dtype).itemsize
    auto_budget, vmem_limit = _vmem_budget()
    budget = auto_budget if block_budget is None else int(block_budget)

    nb, tile, rem = _choose_nd_blocks(N, C, F, itemsize, budget)
    n_blocks = N // nb
    grid = (n_blocks, pl.cdiv(F, tile))

    min_parts, max_parts = pl.pallas_call(
        functools.partial(_nd_minmax_kernel, rem),
        out_shape=(
            jax.ShapeDtypeStruct((n_blocks, C, 1), jnp.float32),
            jax.ShapeDtypeStruct((n_blocks, C, 1), jnp.float32),
        ),
        grid_spec=pltpu.PrefetchScalarGridSpec(
            num_scalar_prefetch=0,
            grid=grid,
            in_specs=[pl.BlockSpec((nb, C, tile), lambda n, j: (n, 0, j))],
            out_specs=(
                pl.BlockSpec((1, C, 1), lambda n, j: (n, 0, 0)),
                pl.BlockSpec((1, C, 1), lambda n, j: (n, 0, 0)),
            ),
            scratch_shapes=[
                pltpu.VMEM((C, 1), jnp.float32),
                pltpu.VMEM((C, 1), jnp.float32),
            ],
        ),
        compiler_params=pltpu.CompilerParams(
            # batch-block axis parallel (megacore on v7x); feature-tile axis is
            # the reduction feeding the resident scratch accumulator.
            dimension_semantics=("parallel", "arbitrary"),
            vmem_limit_bytes=vmem_limit,
        ),
    )(x_view)

    new_min = jnp.minimum(prev_min, jnp.min(min_parts, axis=(0, 2)))
    new_max = jnp.maximum(prev_max, jnp.max(max_parts, axis=(0, 2)))
    return new_min, new_max


@functools.partial(jax.jit, static_argnums=(3,))
def _running_minmax_2d(x, prev_min, prev_max, block_budget):
    """x: (N, C) Linear input (channels already on the lane axis)."""
    N, C = x.shape
    itemsize = jnp.dtype(x.dtype).itemsize
    auto_budget, vmem_limit = _vmem_budget()
    budget = auto_budget if block_budget is None else int(block_budget)

    max_rows = max(_SUBLANE, budget // max(1, C * itemsize))
    if N <= max_rows:
        tile_n, rem_n = N, 0               # full extent: no 8-row alignment needed
    else:
        tile_n = max(_SUBLANE, (max_rows // _SUBLANE) * _SUBLANE)
        rem_n = N % tile_n
    n_blocks = pl.cdiv(N, tile_n)

    min_parts, max_parts = pl.pallas_call(
        functools.partial(_2d_minmax_kernel, rem_n),
        out_shape=(
            jax.ShapeDtypeStruct((n_blocks, 1, C), jnp.float32),
            jax.ShapeDtypeStruct((n_blocks, 1, C), jnp.float32),
        ),
        grid_spec=pltpu.PrefetchScalarGridSpec(
            num_scalar_prefetch=0,
            grid=(n_blocks,),
            in_specs=[pl.BlockSpec((tile_n, C), lambda i: (i, 0))],
            out_specs=(
                pl.BlockSpec((1, 1, C), lambda i: (i, 0, 0)),
                pl.BlockSpec((1, 1, C), lambda i: (i, 0, 0)),
            ),
        ),
        compiler_params=pltpu.CompilerParams(
            dimension_semantics=("parallel",),
            vmem_limit_bytes=vmem_limit,
        ),
    )(x)

    new_min = jnp.minimum(prev_min, jnp.min(min_parts, axis=(0, 1)))
    new_max = jnp.maximum(prev_max, jnp.max(max_parts, axis=(0, 1)))
    return new_min, new_max


# --------------------------------------------------------------------------
# Observer module
# --------------------------------------------------------------------------
class InputEqualizationObserver:
    """JAX/Pallas analogue of _InputEqualizationObserver.

    Tracks running per-column (channel-axis-1) min/max of inputs. forward()
    returns the input unchanged, exactly like the PyTorch observer.
    """

    def __init__(self, num_channels: int, block_budget_bytes=None):
        # Fidelity note: PyTorch starts with empty state and assigns on first
        # forward; starting at +/-inf and folding through min/max yields
        # identical results after the first forward.
        self.min_val = jnp.full((num_channels,), jnp.inf, dtype=jnp.float32)
        self.max_val = jnp.full((num_channels,), -jnp.inf, dtype=jnp.float32)
        self.equalization_scale = jnp.array(1.0, dtype=jnp.float32)
        self.equalization_shape: list[int] = []
        self._block_budget = block_budget_bytes  # None -> generation-aware auto

    def __call__(self, x):
        if not (2 <= x.ndim <= 5):
            raise ValueError(
                "InputEqualizationObserver only supports Linear and Conv layers"
            )
        self.equalization_shape = [1] * x.ndim
        self.equalization_shape[1] = x.shape[1]

        if x.ndim == 2:
            # Linear: channels are already the lane (last) axis.
            self.min_val, self.max_val = _running_minmax_2d(
                x, self.min_val, self.max_val, self._block_budget
            )
        else:
            N, C = x.shape[0], x.shape[1]
            # Free view for contiguous inputs (no HBM transpose / copy).
            x_view = x.reshape(N, C, -1)
            self.min_val, self.max_val = _running_minmax_nd(
                x_view, self.min_val, self.max_val, self._block_budget
            )
        return x  # observer forward returns the original input unchanged

    def get_input_minmax(self):
        return self.min_val, self.max_val

    # TODO(synk): set_equalization_scale / calculate_scaled_minmax are tiny
    # O(C) scalar-glue ops (not forward-path compute); kept in plain JAX.
    def set_equalization_scale(self, equalization_scale):
        equalization_scale = jnp.asarray(equalization_scale)
        if equalization_scale.size == 1 and bool(equalization_scale.reshape(()) == 1):
            return
        self.equalization_scale = jnp.reshape(
            equalization_scale, self.equalization_shape
        )

    def calculate_scaled_minmax(self):
        if self.equalization_scale.size == 1:
            return None, None
        scale = self.equalization_scale.reshape(-1)
        min_scaled = jnp.min(self.min_val * scale)
        max_scaled = jnp.max(self.max_val * scale)
        return min_scaled, max_scaled


if __name__ == "__main__":
    key = jax.random.PRNGKey(0)
    k1, k2, k3, k4, k5 = jax.random.split(key, 5)

    # --- Conv-style NCHW input (N-D path, default block budget) ------------
    N, C, H, W = 2, 4, 16, 16
    x = jax.random.normal(k1, (N, C, H, W), dtype=jnp.float32)
    obs = InputEqualizationObserver(num_channels=C)
    out = jax.block_until_ready(obs(x))          # forward: identity + state update
    min_val, max_val = jax.block_until_ready(obs.get_input_minmax())
    ref_min = jnp.min(x, axis=(0, 2, 3))
    ref_max = jnp.max(x, axis=(0, 2, 3))
    assert jnp.array_equal(out, x), "forward must return input unchanged"
    assert jnp.allclose(min_val, ref_min), (min_val, ref_min)
    assert jnp.allclose(max_val, ref_max), (max_val, ref_max)

    # Second call exercises the running-state merge path.
    x2 = jax.random.normal(k2, (N, C, H, W), dtype=jnp.float32)
    jax.block_until_ready(obs(x2))
    min2, max2 = jax.block_until_ready(obs.get_input_minmax())
    assert jnp.allclose(min2, jnp.minimum(ref_min, jnp.min(x2, axis=(0, 2, 3))))
    assert jnp.allclose(max2, jnp.maximum(ref_max, jnp.max(x2, axis=(0, 2, 3))))

    # --- Linear-style 2-D input (dedicated lane-dense path) ----------------
    xl = jax.random.normal(k3, (8, 32), dtype=jnp.float32)
    obs_l = InputEqualizationObserver(num_channels=32)
    jax.block_until_ready(obs_l(xl))
    ml, Ml = jax.block_until_ready(obs_l.get_input_minmax())
    assert jnp.allclose(ml, jnp.min(xl, axis=0)), (ml,)
    assert jnp.allclose(Ml, jnp.max(xl, axis=0)), (Ml,)

    # --- Tiny block budgets: force the tiled / ragged-mask code paths ------
    x3 = jax.random.normal(k4, (2, 4, 10, 20), dtype=jnp.float32)   # F = 200
    obs3 = InputEqualizationObserver(num_channels=4, block_budget_bytes=2048)
    jax.block_until_ready(obs3(x3))
    m3, M3 = jax.block_until_ready(obs3.get_input_minmax())
    assert jnp.allclose(m3, jnp.min(x3, axis=(0, 2, 3))), (m3,)
    assert jnp.allclose(M3, jnp.max(x3, axis=(0, 2, 3))), (M3,)

    xl2 = jax.random.normal(k5, (20, 32), dtype=jnp.float32)        # ragged rows
    obs_l2 = InputEqualizationObserver(num_channels=32, block_budget_bytes=1024)
    jax.block_until_ready(obs_l2(xl2))
    ml2, Ml2 = jax.block_until_ready(obs_l2.get_input_minmax())
    assert jnp.allclose(ml2, jnp.min(xl2, axis=0)), (ml2,)
    assert jnp.allclose(Ml2, jnp.max(xl2, axis=0)), (Ml2,)

    print("KERNEL_OK")
</pallas_src>

<mosaic_0001>
module attributes {stable_mosaic.version = 11 : i64} {
  func.func @_nd_minmax_kernel(%arg0: i32, %arg1: i32, %arg2: memref<2x4x256xf32, #tpu.memory_space<vmem>>, %arg3: memref<1x4x1xf32, #tpu.memory_space<vmem>>, %arg4: memref<1x4x1xf32, #tpu.memory_space<vmem>>, %arg5: memref<4x1xf32, #tpu.memory_space<vmem>>, %arg6: memref<4x1xf32, #tpu.memory_space<vmem>>) attributes {dimension_semantics = [#tpu.dimension_semantics<parallel>, #tpu.dimension_semantics<arbitrary>], iteration_bounds = array<i64: 1, 1>, scalar_prefetch = 0 : i64, scratch_operands = 2 : i64, tpu.core_type = #tpu.core_type<tc>, window_params = [{transform_indices = @transform_0, window_bounds = array<i64: 2, 4, 256>}, {transform_indices = @transform_1, window_bounds = array<i64: 1, 4, 1>}, {transform_indices = @transform_2, window_bounds = array<i64: 1, 4, 1>}]} {
    %c0_i32 = arith.constant 0 : i32
    %0 = arith.cmpi eq, %arg1, %c0_i32 : i32
    %1 = arith.extui %0 : i1 to i32
    %c0_i32_0 = arith.constant 0 : i32
    %2 = arith.cmpi ne, %1, %c0_i32_0 : i32
    scf.if %2 {
      %cst_16 = arith.constant 0x7F800000 : f32
      %19 = vector.broadcast %cst_16 : f32 to vector<4x1xf32>
      %c0_17 = arith.constant 0 : index
      %c0_18 = arith.constant 0 : index
      %20 = vector.load %arg5[%c0_17, %c0_18] : memref<4x1xf32, #tpu.memory_space<vmem>>, vector<4x1xf32>
      tpu.vector_store %arg5[%c0_17, %c0_18], %19 {strides = array<i32>} : memref<4x1xf32, #tpu.memory_space<vmem>>, vector<4x1xf32>,
      %cst_19 = arith.constant 0xFF800000 : f32
      %21 = vector.broadcast %cst_19 : f32 to vector<4x1xf32>
      %c0_20 = arith.constant 0 : index
      %c0_21 = arith.constant 0 : index
      %22 = vector.load %arg6[%c0_20, %c0_21] : memref<4x1xf32, #tpu.memory_space<vmem>>, vector<4x1xf32>
      tpu.vector_store %arg6[%c0_20, %c0_21], %21 {strides = array<i32>} : memref<4x1xf32, #tpu.memory_space<vmem>>, vector<4x1xf32>,
    } else {
    }
    %c0 = arith.constant 0 : index
    %c0_1 = arith.constant 0 : index
    %c0_2 = arith.constant 0 : index
    %3 = vector.load %arg2[%c0, %c0_1, %c0_2] : memref<2x4x256xf32, #tpu.memory_space<vmem>>, vector<2x4x256xf32>
    %cst = arith.constant dense<0x7F800000> : vector<2x4xf32>
    %4 = vector.multi_reduction <minimumf>, %3, %cst [2] : vector<2x4x256xf32> to vector<2x4xf32>
    %5 = vector.shape_cast %4 : vector<2x4xf32> to vector<2x4x1xf32>
    %cst_3 = arith.constant dense<0x7F800000> : vector<4x1xf32>
    %6 = vector.multi_reduction <minimumf>, %5, %cst_3 [0] : vector<2x4x1xf32> to vector<4x1xf32>
    %cst_4 = arith.constant dense<0xFF800000> : vector<2x4xf32>
    %7 = vector.multi_reduction <maximumf>, %3, %cst_4 [2] : vector<2x4x256xf32> to vector<2x4xf32>
    %8 = vector.shape_cast %7 : vector<2x4xf32> to vector<2x4x1xf32>
    %cst_5 = arith.constant dense<0xFF800000> : vector<4x1xf32>
    %9 = vector.multi_reduction <maximumf>, %8, %cst_5 [0] : vector<2x4x1xf32> to vector<4x1xf32>
    %c0_6 = arith.constant 0 : index
    %c0_7 = arith.constant 0 : index
    %10 = vector.load %arg5[%c0_6, %c0_7] : memref<4x1xf32, #tpu.memory_space<vmem>>, vector<4x1xf32>
    %11 = arith.minimumf %10, %6 : vector<4x1xf32>
    %c0_8 = arith.constant 0 : index
    %c0_9 = arith.constant 0 : index
    %12 = vector.load %arg5[%c0_8, %c0_9] : memref<4x1xf32, #tpu.memory_space<vmem>>, vector<4x1xf32>
    tpu.vector_store %arg5[%c0_8, %c0_9], %11 {strides = array<i32>} : memref<4x1xf32, #tpu.memory_space<vmem>>, vector<4x1xf32>,
    %c0_10 = arith.constant 0 : index
    %c0_11 = arith.constant 0 : index
    %13 = vector.load %arg6[%c0_10, %c0_11] : memref<4x1xf32, #tpu.memory_space<vmem>>, vector<4x1xf32>
    %14 = arith.maximumf %13, %9 : vector<4x1xf32>
    %c0_12 = arith.constant 0 : index
    %c0_13 = arith.constant 0 : index
    %15 = vector.load %arg6[%c0_12, %c0_13] : memref<4x1xf32, #tpu.memory_space<vmem>>, vector<4x1xf32>
    tpu.vector_store %arg6[%c0_12, %c0_13], %14 {strides = array<i32>} : memref<4x1xf32, #tpu.memory_space<vmem>>, vector<4x1xf32>,
    %c0_i32_14 = arith.constant 0 : i32
    %16 = arith.cmpi eq, %arg1, %c0_i32_14 : i32
    %17 = arith.extui %16 : i1 to i32
    %c0_i32_15 = arith.constant 0 : i32
    %18 = arith.cmpi ne, %17, %c0_i32_15 : i32
    scf.if %18 {
      %c0_16 = arith.constant 0 : index
      %c0_17 = arith.constant 0 : index
      %19 = vector.load %arg5[%c0_16, %c0_17] : memref<4x1xf32, #tpu.memory_space<vmem>>, vector<4x1xf32>
      %20 = vector.shape_cast %19 : vector<4x1xf32> to vector<1x4x1xf32>
      %c0_18 = arith.constant 0 : index
      %c0_19 = arith.constant 0 : index
      %c0_20 = arith.constant 0 : index
      %21 = vector.load %arg3[%c0_18, %c0_19, %c0_20] : memref<1x4x1xf32, #tpu.memory_space<vmem>>, vector<1x4x1xf32>
      tpu.vector_store %arg3[%c0_18, %c0_19, %c0_20], %20 {strides = array<i32>} : memref<1x4x1xf32, #tpu.memory_space<vmem>>, vector<1x4x1xf32>,
      %c0_21 = arith.constant 0 : index
      %c0_22 = arith.constant 0 : index
      %22 = vector.load %arg6[%c0_21, %c0_22] : memref<4x1xf32, #tpu.memory_space<vmem>>, vector<4x1xf32>
      %23 = vector.shape_cast %22 : vector<4x1xf32> to vector<1x4x1xf32>
      %c0_23 = arith.constant 0 : index
      %c0_24 = arith.constant 0 : index
      %c0_25 = arith.constant 0 : index
      %24 = vector.load %arg4[%c0_23, %c0_24, %c0_25] : memref<1x4x1xf32, #tpu.memory_space<vmem>>, vector<1x4x1xf32>
      tpu.vector_store %arg4[%c0_23, %c0_24, %c0_25], %23 {strides = array<i32>} : memref<1x4x1xf32, #tpu.memory_space<vmem>>, vector<1x4x1xf32>,
    } else {
    }
    return
  }
  func.func @transform_0(%arg0: i32, %arg1: i32) -> (i32, i32, i32) {
    %c0_i32 = arith.constant 0 : i32
    %c0_i32_0 = arith.constant 0 : i32
    return %arg0, %c0_i32, %arg1 : i32, i32, i32
  }
  func.func @transform_1(%arg0: i32, %arg1: i32) -> (i32, i32, i32) {
    %c0_i32 = arith.constant 0 : i32
    %c0_i32_0 = arith.constant 0 : i32
    %c0_i32_1 = arith.constant 0 : i32
    return %arg0, %c0_i32, %c0_i32_0 : i32, i32, i32
  }
  func.func @transform_2(%arg0: i32, %arg1: i32) -> (i32, i32, i32) {
    %c0_i32 = arith.constant 0 : i32
    %c0_i32_0 = arith.constant 0 : i32
    %c0_i32_1 = arith.constant 0 : i32
    return %arg0, %c0_i32, %c0_i32_0 : i32, i32, i32
  }
}

</mosaic_0001>

<bundles_post_ra>
// kernel: _running_minmax_nd.1
= control target key start
LH: loop header
LB: loop body
LE: loop exit
PB: predicated region body
PF: predicated region fallthrough
CT: control target
= control target key end

     0   :  { %8 = vsyncpa [#allocation5], 0  ;;  %s118_s9 = smov [#allocation4]   ;;  %s165_s0 = inlined_call_operand.hbm [shape: f32[2,4,256], index: 0, kind: input, shape index: {}]   ;;  %s166_s1 = inlined_call_operand.vmem [shape: f32[1,4,1], index: 1, kind: output, shape index: {0}]   ;;  %s167_s2 = inlined_call_operand.vmem [shape: f32[1,4,1], index: 2, kind: output, shape index: {1}]  }
   0x1   :  { %s14_s10 = sshll.u32 %s118_s9, 4  ;;  %s15_s10 = int_to_ptr.vmem [resolvable:$true] %s14_s10 }
   0x2   :  { %s104_s11 = scalar_lea.vmem %s15_s10, 256  ;;  %p109_p1 = scmp.lt.s32.totalorder %s15_s10, %s15_s10 }
   0x3   :  { %p105_p0 = scmp.ne.s32.totalorder %s15_s10, %s104_s11  ;;  %p110_p2 = scmp.lt.s32.totalorder %s104_s11, %s104_s11 }
   0x5   :  { %p111_p3 = por %p110_p2, %p109_p1 }
   0x7   :  { %p112_p4 = pnand %p111_p3, %p105_p0 }
   0x9   :  { %115 = shalt.err (!%p112_p4)
}
   0xa   :  { %s119_s12 = smov 128   ;;  %s120_s13 = smov 8  }
   0xb   :  { %20 = dma.hbm_to_vmem [thread:$0]  %s165_s0, 256, %s15_s10, [#allocation5], %s119_s12, %s119_s12, %s120_s13  }
   0xc   :  { %116 = dma.done.wait [#allocation5], 256  }
   0xd   :  { %117 = vsyncadd [#allocation5], 4294967040  ;;  %vm39_vm0 = vcmask 1043456   ;;  %v31_v0 = vld [vmem:[#allocation4] sm:$0xff]  ;;  %v32_v1 = vld [vmem:[#allocation4 + $0x8] sm:$0xff]  ;;  %vm28_vm1 = vcmask 3072  }
   0xe   :  { %v35_v2 = vcombine.high %v31_v0, %v31_v0  ;;  %v53_v3 = vsel %vm39_vm0, %v31_v0, -inf  ;;  %v40_v4 = vsel %vm39_vm0, %v31_v0, inf  ;;  %v36_v5 = vcombine.high %v32_v1, %v32_v1 }
   0xf   :  { %v58_v6 = vsel %vm39_vm0, %v32_v1, -inf  ;;  %v45_v7 = vsel %vm39_vm0, %v32_v1, inf  ;;  %v121_v16 = vmov -inf   ;;  %v122_v17 = vmov inf  }
  0x10   :  { %v54_v8 = vsel %vm39_vm0, %v35_v2, -inf  ;;  %v41_v9 = vsel %vm39_vm0, %v35_v2, inf  ;;  %v59_v10 = vsel %vm39_vm0, %v36_v5, -inf  ;;  %v46_v11 = vsel %vm39_vm0, %v36_v5, inf  ;;  %30 = vst.msk [vmem:[#allocation3] sm:$0xf] %vm28_vm1, %v121_v16 }
  0x11   :  { %v55_v12 = vmax.f32 %v53_v3, %v54_v8  ;;  %v42_v13 = vmin.f32 %v40_v4, %v41_v9  ;;  %v60_v14 = vmax.f32 %v58_v6, %v59_v10  ;;  %v47_v15 = vmin.f32 %v45_v7, %v46_v11  ;;  %29 = vst.msk [vmem:[#allocation2] sm:$0xf] %vm28_vm1, %v122_v17 }
  0x13   :  { %56 = vmax.xlane.f32.xlu1 %v55_v12  ;;  %43 = vmin.xlane.f32.xlu0 %v42_v13 }
  0x17   :  { %61 = vmax.xlane.f32.xlu1 %v60_v14  ;;  %48 = vmin.xlane.f32.xlu0 %v47_v15  ;;  %v70_v21 = vld [vmem:[#allocation3] sm:$0xf] }
  0x18   :  { %v66_v27 = vld [vmem:[#allocation2] sm:$0xf] }
  0x9c   :  { %v57_v18 = vpop.xlane.xlu1 %56  ;;  %v44_v19 = vpop.xlane.xlu0 %43 }
  0x9d   :  { %v63_v23 = vsel %vm39_vm0, %v57_v18, -inf  ;;  %v50_v24 = vsel %vm39_vm0, %v44_v19, inf }
  0xa0   :  { %v62_v20 = vpop.xlane.xlu1 %61  ;;  %v49_v22 = vpop.xlane.xlu0 %48 }
  0xa1   :  { %v64_v25 = vsel %vm39_vm0, %v62_v20, -inf  ;;  %v51_v26 = vsel %vm39_vm0, %v49_v22, inf }
  0xa2   :  { %v65_v28 = vmax.f32 %v63_v23, %v64_v25  ;;  %v52_v29 = vmin.f32 %v50_v24, %v51_v26 }
  0xa4   :  { %v71_v30 = vmax.f32 %v70_v21, %v65_v28  ;;  %v67_v31 = vmin.f32 %v66_v27, %v52_v29 }
  0xa6   :  { %72 = vst.msk [vmem:[#allocation3] sm:$0xf] %vm28_vm1, %v71_v30  ;;  %69 = vst.msk [vmem:[#allocation2] sm:$0xf] %vm28_vm1, %v67_v31 }
  0xad   :  { %v78_v32 = vld [vmem:[#allocation3] sm:$0xf]  ;;  %v76_v33 = vld [vmem:[#allocation2] sm:$0xf] }
  0xae   :  { %79 = vst.msk [vmem:[%s167_s2] sm:$0xf] %vm28_vm1, %v78_v32  ;;  %77 = vst.msk [vmem:[%s166_s1] sm:$0xf] %vm28_vm1, %v76_v33 }
  0xaf   :  { %88 = vsyncpa [#allocation5], 1 }

</bundles_post_ra>
